<compile_context>
chip_gen: v7x
topology: tpu7x:2x2x1
jax: 0.10.0
libtpu: 0.0.40
codegen_flags: <defaults>
</compile_context>

<pallas_src>
import functools

import jax
import jax.numpy as jnp
from jax.experimental import pallas as pl
from jax.experimental.pallas import tpu as pltpu


# ----------------------------------------------------------------------------
# One-time probes / hardware queries
# ----------------------------------------------------------------------------

_ROLL_PROBE_CACHE = None


def _probe_roll():
    """Returns (roll_available, roll_matches_jnp_roll), probed once on device."""
    global _ROLL_PROBE_CACHE
    if _ROLL_PROBE_CACHE is not None:
        return _ROLL_PROBE_CACHE
    try:
        def _k(x_ref, o_ref):
            o_ref[...] = pltpu.roll(x_ref[...], 1, axis=-1)

        x = jnp.arange(8 * 128, dtype=jnp.float32).reshape(8, 128)
        y = pl.pallas_call(
            _k, out_shape=jax.ShapeDtypeStruct((8, 128), jnp.float32))(x)
        if bool(jnp.array_equal(y, jnp.roll(x, 1, axis=-1))):
            _ROLL_PROBE_CACHE = (True, True)
        elif bool(jnp.array_equal(y, jnp.roll(x, -1, axis=-1))):
            _ROLL_PROBE_CACHE = (True, False)
        else:
            _ROLL_PROBE_CACHE = (False, True)
    except Exception:
        _ROLL_PROBE_CACHE = (False, True)
    return _ROLL_PROBE_CACHE


def _tpu_vmem_capacity():
    try:
        info = pltpu.get_tpu_info()
        cap = getattr(info, "vmem_capacity_bytes", None)
        if cap:
            return int(cap)
    except Exception:
        pass
    return 64 * 1024 * 1024  # conservative default (v7x per-TC)


# ----------------------------------------------------------------------------
# Kernel
# ----------------------------------------------------------------------------

def _residual_conv_kernel(x_ref, e_ref, w_ref, b_ref, o_ref, *,
                          L, TL, K, pad, partial, use_roll, roll_like_jnp):
    # x_ref : (1, C, TL)        centre tile (auto-pipelined, NCL layout)
    # e_ref : (1, 1, C, 2*pad)  left/right boundary columns of this tile
    # w_ref : (K, C_out, C_in)  conv weights, tap-major (VMEM resident)
    # b_ref : (C_out, 1)        f32 bias (VMEM resident)
    # o_ref : (1, C_out, TL)
    del K  # documented via pad
    t = pl.program_id(1)

    xc = x_ref[0]                                     # (C, TL) compute dtype
    need_lane = partial or pad > 0
    lane = (jax.lax.broadcasted_iota(jnp.int32, (xc.shape[0], TL), 1)
            if need_lane else None)

    if partial:
        # Zero columns beyond the valid length of a partial last tile so that
        # shifted taps see correct zero padding at the global right boundary.
        valid = L - t * TL
        xc = jnp.where(lane < valid, xc, jnp.zeros_like(xc))

    w = w_ref[...]                                    # (K, C_out, C_in)

    # Centre tap.
    acc = jnp.dot(w[pad], xc, preferred_element_type=jnp.float32)  # (C_out, TL)

    if pad > 0:
        e = e_ref[0, 0]                               # (C, 2*pad)
        # e[:, :pad]  = x[:, t*TL-pad : t*TL]        (zeros at global left edge)
        # e[:, pad:]  = x[:, t*TL+TL : t*TL+TL+pad]  (zeros at global right edge)

        def shift(a, s_jnp):
            # result[:, j] = a[:, (j - s_jnp) % TL]   == jnp.roll(a, s_jnp, -1)
            s_jnp = s_jnp % TL
            if s_jnp == 0:
                return a
            if use_roll:
                s_hw = s_jnp if roll_like_jnp else (TL - s_jnp) % TL
                return pltpu.roll(a, s_hw, axis=-1)
            # Fallback for small / non-lane-aligned tiles.
            return jnp.concatenate([a[:, TL - s_jnp:], a[:, :TL - s_jnp]],
                                   axis=-1)

        for d in range(1, pad + 1):
            # Tap at offset -d: needs x[:, j - d]; patch lanes 0..d-1 from the
            # left halo columns.
            xl = shift(xc, d)
            for i in range(d):
                col = e[:, pad - d + i: pad - d + i + 1]          # (C, 1)
                xl = jnp.where(lane == i, col, xl)
            acc = acc + jnp.dot(w[pad - d], xl,
                                preferred_element_type=jnp.float32)

            # Tap at offset +d: needs x[:, j + d]; patch lanes TL-d..TL-1 from
            # the right halo columns.
            xr = shift(xc, TL - d)
            for i in range(d):
                col = e[:, pad + d - 1 - i: pad + d - i]          # (C, 1)
                xr = jnp.where(lane == TL - 1 - i, col, xr)
            acc = acc + jnp.dot(w[pad + d], xr,
                                preferred_element_type=jnp.float32)

    acc = acc + b_ref[...]                    # bias, broadcast over L (f32)
    acc = acc + xc.astype(jnp.float32)        # residual from the resident tile
    o_ref[0] = acc.astype(o_ref.dtype)


# ----------------------------------------------------------------------------
# Wrapper
# ----------------------------------------------------------------------------

def _pick_tile_l(L, C, itemsize, vmem_cap, tile_l=None):
    """L tile: multiple of 128 (or full L); budget scales with VMEM capacity."""
    if tile_l is not None:
        tile_l = min(tile_l, L)
        assert tile_l == L or tile_l % 128 == 0, \
            "tile_l must be a multiple of 128 or >= L"
        return tile_l
    if L <= 512:
        return L
    # ~8 MiB per input tile on 128 MiB parts (v5e/v6e), ~4 MiB on v7x (64 MiB).
    budget = max(2 << 20, vmem_cap // 16)
    tl = budget // max(1, C * itemsize)
    tl = max(128, (tl // 128) * 128)
    if tl >= L:
        return L
    return tl


def residual_conv(x_ncl, weight, bias, *, compute_dtype=None, tile_l=None):
    """inputs + Conv1d(inputs), eval-mode dropout (identity).

    x_ncl : (N, C, L)        PyTorch NCL layout
    weight: (C_out, C_in, K) PyTorch Conv1d weight layout
    bias  : (C_out,)
    compute_dtype: optional matmul/activation dtype (e.g. jnp.bfloat16);
                   accumulation stays f32, output keeps x_ncl.dtype.
    """
    N, C_in, L = x_ncl.shape
    C_out, C_in_w, K = weight.shape
    assert C_in == C_in_w and C_out == C_in, "residual requires shape-preserving conv"
    assert K % 2 == 1, "odd kernel size expected for 'same' padding"
    pad = (K - 1) // 2
    C = C_in

    out_dtype = x_ncl.dtype
    cdt = jnp.dtype(compute_dtype) if compute_dtype is not None else jnp.dtype(out_dtype)
    x_c = x_ncl.astype(cdt)
    w_kio = jnp.transpose(weight, (2, 0, 1)).astype(cdt)      # (K, C_out, C_in)
    b_col = bias.astype(jnp.float32).reshape(C_out, 1)        # (C_out, 1)

    itemsize = jnp.dtype(cdt).itemsize
    vmem_cap = _tpu_vmem_capacity()
    TL = _pick_tile_l(L, C, itemsize, vmem_cap, tile_l)
    assert TL >= pad, "tile length must be at least the conv padding"
    T = pl.cdiv(L, TL)
    partial = (L % TL) != 0

    # Boundary ("halo") columns per tile, built once on the XLA side.  This is
    # a tiny fused gather (N*T*C*2*pad elements) and becomes a normal
    # auto-pipelined input, so halo fetches are prefetched a grid step ahead.
    if pad > 0:
        Lr = T * TL
        xpad = jnp.pad(x_c, ((0, 0), (0, 0), (pad, pad + Lr - L)))
        tiles = []
        for t in range(T):
            left = xpad[:, :, t * TL: t * TL + pad]
            right = xpad[:, :, (t + 1) * TL + pad: (t + 1) * TL + 2 * pad]
            tiles.append(jnp.concatenate([left, right], axis=-1))
        edges = jnp.stack(tiles, axis=1)                       # (N, T, C, 2*pad)
    else:
        edges = jnp.zeros((N, T, C, 2), dtype=cdt)
    EW = edges.shape[-1]

    roll_ok, roll_like_jnp = _probe_roll()
    use_roll = roll_ok and (TL % 128 == 0)

    kernel = functools.partial(
        _residual_conv_kernel, L=L, TL=TL, K=K, pad=pad, partial=partial,
        use_roll=use_roll, roll_like_jnp=roll_like_jnp)

    # VMEM working-set estimate -> explicit limit, kept 16 MiB under capacity.
    x_tile_b = C * TL * itemsize
    o_tile_b = C_out * TL * jnp.dtype(out_dtype).itemsize
    edge_b = C * 128 * itemsize                 # lane-padded edge tile
    w_b = K * C_out * C * itemsize + C_out * 4  # single-buffered residents
    interm_b = 4 * C_out * TL * 4               # f32 acc + shifted copies
    est = 2 * (x_tile_b + o_tile_b + edge_b) + w_b + interm_b + (2 << 20)
    vmem_limit = int(min(max(est, 32 << 20),
                         max(vmem_cap - (16 << 20), 32 << 20)))

    out = pl.pallas_call(
        kernel,
        out_shape=jax.ShapeDtypeStruct((N, C_out, L), out_dtype),
        grid_spec=pltpu.PrefetchScalarGridSpec(
            num_scalar_prefetch=0,
            grid=(N, T),
            in_specs=[
                # centre tile, auto-pipelined (bulk of the HBM traffic)
                pl.BlockSpec((1, C, TL), lambda n, t: (n, 0, t)),
                # per-tile boundary columns, auto-pipelined (tiny, contiguous)
                pl.BlockSpec((1, 1, C, EW), lambda n, t: (n, t, 0, 0)),
                # weights + bias: whole-array VMEM resident (single buffer)
                pl.BlockSpec(memory_space=pltpu.MemorySpace.VMEM),
                pl.BlockSpec(memory_space=pltpu.MemorySpace.VMEM),
            ],
            out_specs=pl.BlockSpec((1, C_out, TL), lambda n, t: (n, 0, t)),
        ),
        compiler_params=pltpu.CompilerParams(
            dimension_semantics=("parallel", "parallel"),
            vmem_limit_bytes=vmem_limit,
        ),
    )(x_c, edges, w_kio, b_col)
    return out


# ----------------------------------------------------------------------------
# Reference + self-test
# ----------------------------------------------------------------------------

def _reference(x_ncl, weight, bias):
    """Pure-JAX reference: inputs + Conv1d(inputs) (eval-mode dropout)."""
    K = weight.shape[-1]
    pad = (K - 1) // 2
    conv = jax.lax.conv_general_dilated(
        x_ncl, weight,
        window_strides=(1,),
        padding=((pad, pad),),
        dimension_numbers=("NCH", "OIH", "NCH"),
    )
    return x_ncl + conv + bias[None, :, None]


if __name__ == "__main__":
    key = jax.random.PRNGKey(0)
    k_x, k_w, k_b, k_x2, k_x3 = jax.random.split(key, 5)

    # ---- primary check: module-scale shapes (N=2, C=4, L=16), f32 -----------
    N, C, L, K = 2, 4, 16, 3
    fan_in = C * K
    bound = 1.0 / (fan_in ** 0.5)
    x = jax.random.normal(k_x, (N, C, L), dtype=jnp.float32)
    weight = jax.random.uniform(k_w, (C, C, K), minval=-bound, maxval=bound,
                                dtype=jnp.float32)
    bias = jax.random.uniform(k_b, (C,), minval=-bound, maxval=bound,
                              dtype=jnp.float32)

    out = jax.block_until_ready(residual_conv(x, weight, bias))
    ref = _reference(x, weight, bias)
    assert out.shape == (N, C, L)
    assert jnp.allclose(out, ref, atol=1e-4, rtol=1e-4), "mismatch vs reference (f32)"

    # ---- tiled path: L=384 in 3 tiles of 128 -> exercises halo/roll path -----
    N2, C2, L2 = 2, 8, 384
    x2 = jax.random.normal(k_x2, (N2, C2, L2), dtype=jnp.float32)
    w2 = jax.random.uniform(k_w, (C2, C2, K), minval=-bound, maxval=bound,
                            dtype=jnp.float32)
    b2 = jax.random.uniform(k_b, (C2,), minval=-bound, maxval=bound,
                            dtype=jnp.float32)
    out2 = jax.block_until_ready(residual_conv(x2, w2, b2, tile_l=128))
    ref2 = _reference(x2, w2, b2)
    assert jnp.allclose(out2, ref2, atol=1e-4, rtol=1e-4), "mismatch vs reference (tiled)"

    # ---- partial last tile: L=320 with TL=128 (valid=64 on the last tile) ----
    L3 = 320
    x3 = jax.random.normal(k_x3, (N2, C2, L3), dtype=jnp.float32)
    out3 = jax.block_until_ready(residual_conv(x3, w2, b2, tile_l=128))
    ref3 = _reference(x3, w2, b2)
    assert jnp.allclose(out3, ref3, atol=1e-4, rtol=1e-4), \
        "mismatch vs reference (partial tile)"

    # ---- bf16 compute path (halved HBM traffic for activations/weights) ------
    out4 = jax.block_until_ready(
        residual_conv(x2, w2, b2, compute_dtype=jnp.bfloat16, tile_l=128))
    assert out4.dtype == x2.dtype
    assert jnp.allclose(out4.astype(jnp.float32), ref2, atol=5e-2, rtol=5e-2), \
        "mismatch vs reference (bf16 compute)"

    print("KERNEL_OK")
</pallas_src>

<mosaic_0001>
module attributes {stable_mosaic.version = 11 : i64} {
  func.func @_residual_conv_kernel(%arg0: i32, %arg1: i32, %arg2: memref<1x4x16xf32, #tpu.memory_space<vmem>>, %arg3: memref<1x1x4x2xf32, #tpu.memory_space<vmem>>, %arg4: memref<3x4x4xf32, #tpu.memory_space<vmem>>, %arg5: memref<4x1xf32, #tpu.memory_space<vmem>>, %arg6: memref<1x4x16xf32, #tpu.memory_space<vmem>>) attributes {dimension_semantics = [#tpu.dimension_semantics<parallel>, #tpu.dimension_semantics<parallel>], iteration_bounds = array<i64: 2, 1>, scalar_prefetch = 0 : i64, scratch_operands = 0 : i64, tpu.core_type = #tpu.core_type<tc>, window_params = [{transform_indices = @transform_0, window_bounds = array<i64: 1, 4, 16>}, {transform_indices = @transform_1, window_bounds = array<i64: 1, 1, 4, 2>}, {pipeline_mode = #tpu.pipeline_mode<synchronous>, transform_indices = @transform_2, window_bounds = array<i64: 3, 4, 4>}, {pipeline_mode = #tpu.pipeline_mode<synchronous>, transform_indices = @transform_3, window_bounds = array<i64: 4, 1>}, {transform_indices = @transform_4, window_bounds = array<i64: 1, 4, 16>}]} {
    %c0 = arith.constant 0 : index
    %c0_0 = arith.constant 0 : index
    %c0_1 = arith.constant 0 : index
    %0 = vector.load %arg2[%c0, %c0_0, %c0_1] : memref<1x4x16xf32, #tpu.memory_space<vmem>>, vector<1x4x16xf32>
    %1 = vector.shape_cast %0 : vector<1x4x16xf32> to vector<4x16xf32>
    %2 = tpu.iota {dimensions = array<i32: 1>} : vector<4x16xi32>
    %c0_2 = arith.constant 0 : index
    %c0_3 = arith.constant 0 : index
    %c0_4 = arith.constant 0 : index
    %3 = vector.load %arg4[%c0_2, %c0_3, %c0_4] : memref<3x4x4xf32, #tpu.memory_space<vmem>>, vector<3x4x4xf32>
    %4 = vector.extract_strided_slice %3 {offsets = [1, 0, 0], sizes = [1, 4, 4], strides = [1, 1, 1]} : vector<3x4x4xf32> to vector<1x4x4xf32>
    %5 = vector.shape_cast %4 : vector<1x4x4xf32> to vector<4x4xf32>
    %cst = arith.constant dense<0.000000e+00> : vector<4x16xf32>
    %6 = tpu.matmul %5, %1, %cst {dimension_numbers = #tpu.dot_dimension_numbers<[1], [0], [0], [1], [0, 0, 1, 1], [], []>} : vector<4x4xf32>, vector<4x16xf32>, vector<4x16xf32> -> vector<4x16xf32>
    %c0_5 = arith.constant 0 : index
    %c0_6 = arith.constant 0 : index
    %c0_7 = arith.constant 0 : index
    %c0_8 = arith.constant 0 : index
    %7 = vector.load %arg3[%c0_5, %c0_6, %c0_7, %c0_8] : memref<1x1x4x2xf32, #tpu.memory_space<vmem>>, vector<1x1x4x2xf32>
    %8 = vector.shape_cast %7 : vector<1x1x4x2xf32> to vector<4x2xf32>
    %9 = vector.extract_strided_slice %1 {offsets = [0, 15], sizes = [4, 1], strides = [1, 1]} : vector<4x16xf32> to vector<4x1xf32>
    %10 = vector.extract_strided_slice %1 {offsets = [0, 0], sizes = [4, 15], strides = [1, 1]} : vector<4x16xf32> to vector<4x15xf32>
    %11 = tpu.concatenate %9, %10 in 1 : vector<4x1xf32>, vector<4x15xf32> -> vector<4x16xf32>
    %12 = vector.extract_strided_slice %8 {offsets = [0, 0], sizes = [4, 1], strides = [1, 1]} : vector<4x2xf32> to vector<4x1xf32>
    %c0_i32 = arith.constant 0 : i32
    %13 = vector.broadcast %c0_i32 : i32 to vector<4x16xi32>
    %14 = arith.cmpi eq, %2, %13 : vector<4x16xi32>
    %15 = vector.shape_cast %12 : vector<4x1xf32> to vector<4x1xf32>
    %16 = vector.broadcast %15 : vector<4x1xf32> to vector<4x16xf32>
    %17 = arith.select %14, %16, %11 : vector<4x16xi1>, vector<4x16xf32>
    %18 = vector.extract_strided_slice %3 {offsets = [0, 0, 0], sizes = [1, 4, 4], strides = [1, 1, 1]} : vector<3x4x4xf32> to vector<1x4x4xf32>
    %19 = vector.shape_cast %18 : vector<1x4x4xf32> to vector<4x4xf32>
    %cst_9 = arith.constant dense<0.000000e+00> : vector<4x16xf32>
    %20 = tpu.matmul %19, %17, %cst_9 {dimension_numbers = #tpu.dot_dimension_numbers<[1], [0], [0], [1], [0, 0, 1, 1], [], []>} : vector<4x4xf32>, vector<4x16xf32>, vector<4x16xf32> -> vector<4x16xf32>
    %21 = arith.addf %6, %20 : vector<4x16xf32>
    %22 = vector.extract_strided_slice %1 {offsets = [0, 1], sizes = [4, 15], strides = [1, 1]} : vector<4x16xf32> to vector<4x15xf32>
    %23 = vector.extract_strided_slice %1 {offsets = [0, 0], sizes = [4, 1], strides = [1, 1]} : vector<4x16xf32> to vector<4x1xf32>
    %24 = tpu.concatenate %22, %23 in 1 : vector<4x15xf32>, vector<4x1xf32> -> vector<4x16xf32>
    %25 = vector.extract_strided_slice %8 {offsets = [0, 1], sizes = [4, 1], strides = [1, 1]} : vector<4x2xf32> to vector<4x1xf32>
    %c15_i32 = arith.constant 15 : i32
    %26 = vector.broadcast %c15_i32 : i32 to vector<4x16xi32>
    %27 = arith.cmpi eq, %2, %26 : vector<4x16xi32>
    %28 = vector.shape_cast %25 : vector<4x1xf32> to vector<4x1xf32>
    %29 = vector.broadcast %28 : vector<4x1xf32> to vector<4x16xf32>
    %30 = arith.select %27, %29, %24 : vector<4x16xi1>, vector<4x16xf32>
    %31 = vector.extract_strided_slice %3 {offsets = [2, 0, 0], sizes = [1, 4, 4], strides = [1, 1, 1]} : vector<3x4x4xf32> to vector<1x4x4xf32>
    %32 = vector.shape_cast %31 : vector<1x4x4xf32> to vector<4x4xf32>
    %cst_10 = arith.constant dense<0.000000e+00> : vector<4x16xf32>
    %33 = tpu.matmul %32, %30, %cst_10 {dimension_numbers = #tpu.dot_dimension_numbers<[1], [0], [0], [1], [0, 0, 1, 1], [], []>} : vector<4x4xf32>, vector<4x16xf32>, vector<4x16xf32> -> vector<4x16xf32>
    %34 = arith.addf %21, %33 : vector<4x16xf32>
    %c0_11 = arith.constant 0 : index
    %c0_12 = arith.constant 0 : index
    %35 = vector.load %arg5[%c0_11, %c0_12] : memref<4x1xf32, #tpu.memory_space<vmem>>, vector<4x1xf32>
    %36 = vector.broadcast %35 : vector<4x1xf32> to vector<4x16xf32>
    %37 = arith.addf %34, %36 : vector<4x16xf32>
    %38 = arith.addf %37, %1 : vector<4x16xf32>
    %c0_13 = arith.constant 0 : index
    %c0_14 = arith.constant 0 : index
    %c0_15 = arith.constant 0 : index
    %39 = vector.load %arg6[%c0_13, %c0_14, %c0_15] : memref<1x4x16xf32, #tpu.memory_space<vmem>>, vector<1x4x16xf32>
    %40 = vector.shape_cast %39 : vector<1x4x16xf32> to vector<4x16xf32>
    %41 = vector.shape_cast %38 : vector<4x16xf32> to vector<1x4x16xf32>
    tpu.vector_store %arg6[%c0_13, %c0_14, %c0_15], %41 {strides = array<i32>} : memref<1x4x16xf32, #tpu.memory_space<vmem>>, vector<1x4x16xf32>,
    return
  }
  func.func @transform_0(%arg0: i32, %arg1: i32) -> (i32, i32, i32) {
    %c0_i32 = arith.constant 0 : i32
    %c0_i32_0 = arith.constant 0 : i32
    return %arg0, %c0_i32, %arg1 : i32, i32, i32
  }
  func.func @transform_1(%arg0: i32, %arg1: i32) -> (i32, i32, i32, i32) {
    %c0_i32 = arith.constant 0 : i32
    %c0_i32_0 = arith.constant 0 : i32
    %c0_i32_1 = arith.constant 0 : i32
    return %arg0, %arg1, %c0_i32, %c0_i32_0 : i32, i32, i32, i32
  }
  func.func @transform_2(%arg0: i32, %arg1: i32) -> (i32, i32, i32) {
    %c0_i32 = arith.constant 0 : i32
    %c0_i32_0 = arith.constant 0 : i32
    %c0_i32_1 = arith.constant 0 : i32
    %c0_i32_2 = arith.constant 0 : i32
    return %c0_i32, %c0_i32_0, %c0_i32_1 : i32, i32, i32
  }
  func.func @transform_3(%arg0: i32, %arg1: i32) -> (i32, i32) {
    %c0_i32 = arith.constant 0 : i32
    %c0_i32_0 = arith.constant 0 : i32
    %c0_i32_1 = arith.constant 0 : i32
    return %c0_i32, %c0_i32_0 : i32, i32
  }
  func.func @transform_4(%arg0: i32, %arg1: i32) -> (i32, i32, i32) {
    %c0_i32 = arith.constant 0 : i32
    %c0_i32_0 = arith.constant 0 : i32
    return %arg0, %c0_i32, %arg1 : i32, i32, i32
  }
}

</mosaic_0001>

<bundles_post_ra>
// kernel: tpu_custom_call.1
= control target key start
LH: loop header
LB: loop body
LE: loop exit
PB: predicated region body
PF: predicated region fallthrough
CT: control target
= control target key end

     0   :  { %9 = vsyncpa [#allocation3], 0  ;;  %s988_s0 = inlined_call_operand.vmem [shape: f32[2,4,16], index: 0, kind: input, shape index: {}]   ;;  %s989_s1 = inlined_call_operand.vmem [shape: f32[2,1,4,2], index: 1, kind: input, shape index: {}]   ;;  %s990_s2 = inlined_call_operand.vmem [shape: f32[3,4,4], index: 2, kind: input, shape index: {}]   ;;  %s991_s3 = inlined_call_operand.vmem [shape: f32[4,1], index: 3, kind: input, shape index: {}]   ;;  %s992_s4 = inlined_call_operand.hbm [shape: f32[2,4,16], index: 4, kind: output, shape index: {}]  }
   0x1   :  { %11 = vsyncpa [#allocation3 + $0x1], 0  ;;  %s844_s15 = smov 0   ;;  %s846_s16 = smov 0  }
   0x2   :  { %s848_s17 = smov 0   ;;  %s850_s18 = smov 0  }
   0x3   :  { %s852_s19 = smov 0   ;;  %s854_s20 = smov 0  }
   0x4 LB: > { %s624_s21 = sadd.s32 4294967295, %s808_s20   ;;  %s625_s22 = sadd.s32 4294967294, %s808_s20   ;;  %s808_s20 = sphi %s854_s20, %s17_s20   ;;  %s804_s19 = sphi %s852_s19, %s999_s19   ;;  %s800_s18 = sphi %s850_s18, %s998_s18   ;;  %s796_s17 = sphi %s848_s17, %s997_s17   ;;  %s792_s16 = sphi %s846_s16, %s996_s16   ;;  %s788_s15 = sphi %s844_s15, %s995_s15  }
   0x5   : > { %s29_s23 = sadd.s32 1, %s804_s19  ;;  %s136_s24 = sadd.s32 1, %s796_s17 }
   0x6   : > { %p31_p0 = scmp.ge.s32.totalorder %s29_s23, 2  ;;  %p146_p1 = scmp.ne.s32.totalorder %s796_s17, %s792_s16 }
   0x7   : > { %p147_p2 = scmp.eq.s32.totalorder %s624_s21, 1  ;;  %p152_p3 = scmp.ne.s32.totalorder %s792_s16, %s788_s15 }
   0x8   : > { %s1001_s23 = smov (%p31_p0, %s29_s23), 0  ;;  %p153_p5 = scmp.eq.s32.totalorder %s625_s22, 1 }
   0x9   : > { %p884_p4 = por %p147_p2, %p146_p1  ;;  %s131_s26 = ssub.s32 %s804_s19, %s1001_s23 }
   0xa   : > { %p628_p6 = scmp.ge.s32.totalorder %s808_s20, 1  ;;  %p134_p7 = scmp.eq.s32.totalorder %s131_s26, 0 }
   0xb   : > { %p891_p8 = por %p153_p5, %p152_p3  ;;  %p197_p9 = scmp.lt.s32.totalorder %s808_s20, 3 }
   0xc   : > { %s897_s28 = scalar_select %p134_p7, %s796_s17, %s136_s24  }
   0xd   : > { %p198_p10 = pnand %p628_p6, %p197_p9 }
   0xe   : > { %p232_p11 = scmp.lt.s32.totalorder (!%p198_p10), %s800_s18, 1  ;;  %v810_v0 = vmov (!%p198_p10), 0   ;;  %s811_s11 = smov (!%p198_p10), 113   ;;  %v812_v3 = vmov (!%p198_p10), 0.0   ;;  %vm273_vm0 = vcmask (!%p198_p10), 1043456   ;;  %v813_v4 = vmov (!%p198_p10), 1  }
   0xf   : > { %201 = sbr.rel (%p198_p10) target bundleno = 399 (0x18f), region = 36  ;;  %726 = vset.pattern.permute.xlu0 (!%p198_p10), %v810_v0  ;;  %728 = vset.pattern.permute.xlu1 (!%p198_p10), %v810_v0  ;;  %s814_s12 = smov (!%p198_p10), 1   ;;  %vm815_vm1 = vmmov (!%p198_p10), 0   ;;  %vm269_vm2 = vcmask (!%p198_p10), 31744   ;;  %v250_v5 = vld [vmem:[%s990_s2 + $0x4] sm:$0xf] (!%p198_p10)  ;;  %v247_v8 = vlaneseq (!%p198_p10) }
  0x10   : > { %648 = vmatprep.subr.mxu0 (!%p198_p10), %v812_v3  ;;  %653 = vmatprep.subr.mxu1 (!%p198_p10), %v812_v3  ;;  %s816_s21 = smov (!%p198_p10), 127   ;;  %s817_s22 = smov (!%p198_p10), 15   ;;  %v513_v6 = vld [vmem:[%s991_s3] sm:$0xf] (!%p198_p10)  ;;  %vm260_vm3 = vcmask (!%p198_p10), 7168   ;;  %vm428_vm5 = vcmask (!%p198_p10), 121856  }
  0x11   : > { %650 = vmatprep.mubr.msk.f32.mxu0 (!%p198_p10), %vm815_vm1, %v812_v3  ;;  %655 = vmatprep.mubr.msk.f32.mxu1 (!%p198_p10), %vm815_vm1, %v812_v3  ;;  %v248_v9 = vand.u32 (!%p198_p10), 127, %v247_v8  ;;  %v249_v13 = vld [vmem:[%s990_s2] sm:$0xf] (!%p198_p10)  ;;  %v251_v19 = vld [vmem:[%s990_s2 + $0x8] sm:$0xf] (!%p198_p10)  ;;  %s639_s9 = sshll.u32 (!%p198_p10), %s800_s18, 6 }
  0x12   : > { %vm521_vm7 = vcmask (!%p198_p10), 125952   ;;  %s941_s14 = scalar_lea.hbm (!%p198_p10), %s992_s4, %s639_s9 }
  0x13   : > { %vm262_vm4 = vcmp.eq.s32.totalorder (!%p198_p10), %v248_v9, 0  ;;  %vm430_vm6 = vcmp.eq.s32.totalorder (!%p198_p10), %v248_v9, 15 }
  0x16   : > { %s233_s29 = scalar_select %p232_p11, %s800_s18, 1 }
  0x17   : > { %s818_s18 = smov [#allocation2]  }
  0x18   : > { %s630_s30 = sshll.u32 %s233_s29, 2  ;;  %s734_s24 = sshll.u32 %s818_s18, 4  ;;  %s735_s24 = int_to_ptr.vmem [resolvable:$false] %s734_s24 }
  0x19   : > { %s245_s7 = scalar_lea.vmem %s989_s1, %s630_s30  ;;  %s238_s10 = scalar_lea.vmem %s988_s0, %s630_s30 }
  0x1a   : > { %v252_v1 = vld [vmem:[%s245_s7] sm:$0xf]  ;;  %s229_s7 = sand.u32 1, %s792_s16   ;;  %s736_s26 = scalar_lea.vmem %s735_s24, 128 }
  0x1b   : > { %v907_v2 = vld [vmem:[%s238_s10] sm:$0xf]  ;;  %265 = vperm.xlu0 %726, %v252_v1   ;;  %s629_s8 = sshll.u32 %s229_s7, 2 }
  0x1c   : > { %254 = vrot.lane.b32.xlu1 %v907_v2, %s811_s11  ;;  %654 = vmatpush3.msk.msra.mxu1 %vm273_vm0, %v907_v2  ;;  %s231_s10 = scalar_lea.vmem [#allocation2], %s629_s8 }
  0x1d   : > { %656 = vmatmul.mubr.msk.f32.vlgmr.msra.gmra.mrb[0].mxu1 %vm269_vm2, %v250_v5  ;;  %s538_s11 = sshll.u32 %s231_s10, 4  ;;  %s943_s11 = int_to_ptr.vmem [resolvable:$true] %s538_s11 }
  0x1e   : > { %p737_p1 = scmp.lt.s32.totalorder %s943_s11, %s735_s24 }
  0x1f   : > { %727 = vset.pattern.permute.xlu0 %v813_v4 }
  0x20   : > { %257 = vrot.lane.b32.xlu1 %v907_v2, %s814_s12  ;;  %432 = vperm.xlu0 %727, %v252_v1  }
  0x24   : > { %422 = vrot.lane.b32.xlu1 %v907_v2, %s816_s21  ;;  %425 = vrot.lane.b32.xlu0 %v907_v2, %s817_s22  ;;  %s524_s21 = scalar_lea.sflag [#allocation3], %s229_s7  ;;  %s730_s22 = scalar_lea.vmem %s943_s11, 64 }
  0x25   : > { %729 = vset.pattern.permute.xlu0 %v810_v0  ;;  %p731_p12 = scmp.ne.s32.totalorder %s943_s11, %s730_s22  ;;  %p738_p2 = scmp.lt.s32.totalorder %s736_s26, %s730_s22 }
  0x27   : > { %p732_p13 = pnand %p731_p12, %p884_p4  ;;  %p739_p3 = por %p738_p2, %p737_p1 }
  0x28   : > { %516 = vperm.xlu1 %728, %v513_v6  }
  0x29   : > { %p733_p0 = pneg %p732_p13 }
  0x2b   : > { %p740_p5 = pnand %p739_p3, %p733_p0 }
  0x8e   : > { %v255_v7 = vpop.permute.xlu1 %254 }
  0x92   : > { %v258_v10 = vpop.permute.xlu1 %257 }
  0x93   : > { %v261_v11 = vsel %vm260_vm3, %v255_v7, %v258_v10 }
  0x96   : > { %v423_v16 = vpop.permute.xlu1 %422 }
  0x9a   : > { %v266_v12 = vpop.permute.xlu0 %265 }
  0x9b   : > { %v268_v14 = vsel %vm262_vm4, %v266_v12, %v261_v11 }
  0x9c   : > { %649 = vmatpush3.msk.msra.mxu0 %vm273_vm0, %v268_v14 }
  0x9d   : > { %651 = vmatmul.mubr.msk.f32.vlgmr.msra.gmra.mrb[0].mxu0 %vm269_vm2, %v249_v13  ;;  %658 = vmatprep.subr.mxu0 %v812_v3 }
  0x9e   : > { %660 = vmatprep.mubr.msk.f32.mxu0 %vm815_vm1, %v812_v3 }
  0x9f   : > { %v433_v15 = vpop.permute.xlu0 %432 }
  0xa3   : > { %v426_v17 = vpop.permute.xlu0 %425 }
  0xa4   : > { %v429_v18 = vsel %vm428_vm5, %v423_v16, %v426_v17 }
  0xa5   : > { %v435_v20 = vsel %vm430_vm6, %v433_v15, %v429_v18 }
  0xa6   : > { %659 = vmatpush3.msk.msra.mxu0 %vm273_vm0, %v435_v20 }
  0xa7   : > { %661 = vmatmul.mubr.msk.f32.vlgmr.msra.gmra.mrb[2].mxu0 %vm269_vm2, %v251_v19  ;;  %v517_v27 = vpop.permute.xlu1 %516 }
  0xf0   : > { %v418_v21 = vpop.f32.mrb[0].mxu1 }
  0xf1   : > { %v657_v22 = vpop.f32.mrb[1].mxu1 }
 0x170   : > { %v343_v23 = vpop.f32.mrb[0].mxu0 }
 0x171   : > { %v652_v24 = vpop.f32.mrb[1].mxu0  ;;  %v419_v25 = vadd.f32 %v418_v21, %v343_v23 }
 0x17a   : > { %v508_v26 = vpop.f32.mrb[2].mxu0 }
 0x17b   : > { %v512_v28 = vadd.f32 %v508_v26, %v419_v25  ;;  %v662_v29 = vpop.f32.mrb[3].mxu0 }
 0x17d   : > { %v519_v30 = vadd.f32 %v517_v27, %v512_v28 }
 0x17f   : > { %v520_v31 = vadd.f32 %v519_v30, %v907_v2 }
 0x181   : > { %522 = vst.msk [vmem:[%s231_s10] sm:$0xf] %vm521_vm7, %v520_v31 }
 0x182   : > { %743 = shalt.err (!%p740_p5)
}
 0x183   : > { %s744_s29 = scalar_lea.hbm %s941_s14, 64  ;;  %s748_s6 = scalar_lea.hbm %s992_s4, 128 }
 0x184   : > { %p745_p6 = scmp.ne.s32.totalorder %s941_s14, %s744_s29  ;;  %p749_p10 = scmp.lt.u32.totalorder %s941_s14, %s992_s4 }
 0x185   : > { %p750_p11 = scmp.lt.u32.totalorder %s748_s6, %s744_s29  ;;  %p752_p13 = scmp.lt.u32.totalorder %s744_s29, %s941_s14 }
 0x186   : > { %p746_p7 = pnand %p745_p6, %p884_p4 }
 0x187   : > { %p751_p12 = por %p750_p11, %p749_p10 }
 0x188   : > { %p747_p9 = pneg %p746_p7 }
 0x189   : > { %p753_p0 = por %p752_p13, %p751_p12 }
 0x18b   : > { %p754_p1 = pnand %p753_p0, %p747_p9 }
 0x18d   : > { %757 = shalt.err (!%p754_p1)
}
 0x18e   : > { %663 = dma.vmem_to_hbm [thread:$0]  (%p884_p4), %s943_s11, 64, %s941_s14, %s524_s21  }
 0x18f PF: > { %p669_p2 = scmp.ge.s32.totalorder %s808_s20, 2  ;;  %s550_s9 = sand.u32 1, %s788_s15  }
 0x190   : > { %s551_s10 = scalar_lea.sflag [#allocation3], %s550_s9 }
 0x191   : > { %p666_p3 = pnand %p669_p2, %p891_p8 }
 0x193   : > { %783 = dma.done.wait (!%p666_p3), %s551_s10, 64  }
 0x194   : > { %785 = vsyncadd (!%p666_p3), %s551_s10, 4294967232  ;;  %s17_s20 = sadd.s32 1, %s808_s20   ;;  %s995_s15 = smov %s792_s16 }
 0x195   : > { %p14_p5 = scmp.ge.s32.totalorder %s17_s20, 4   ;;  %s996_s16 = smov %s796_s17 }
 0x196   : > { %s997_s17 = smov %s897_s28  ;;  %s998_s18 = smov %s804_s19 }
 0x197   : > { %s999_s19 = smov %s1001_s23  ;;  %16 = sbr.rel (!%p14_p5) target bundleno = 4 (0x4), region = 74 }
 0x19e   :  { %556 = vsyncpa [#allocation3], 1 }
 0x19f   :  { %558 = vsyncpa [#allocation3 + $0x1], 1 }

</bundles_post_ra>
